<compile_context>
chip_gen: v6e
topology: v6e:2x2x1
jax: 0.10.0
libtpu: 0.0.40
codegen_flags: <defaults>
</compile_context>

<pallas_src>
import jax
import jax.numpy as jnp
from jax.experimental import pallas as pl
from jax.experimental.pallas import tpu as pltpu


def _double_conv_kernel(x_ref, wb1_ref, s1_ref, t1_ref, wb2_ref, s2_ref, t2_ref, o_ref):
    """Fused (conv3x3 -> BN -> ReLU) x 2 for a block of Bt images.

    x_ref  : (Bt, H, W*Cin)      bf16  NHWC rows, lane = w*Cin + ci
    wb1_ref: (3*W*Cin, W*Cmid)   bf16  banded weights, dy folded into K
    s1/t1  : (1, W*Cmid)         f32   folded BN scale/shift, tiled along W
    wb2_ref: (3*W*Cmid, W*Cout)  bf16
    s2/t2  : (1, W*Cout)         f32
    o_ref  : (Bt, H, W*Cout)     bf16  lane-dense output rows
    """
    Bt, H, WCin = x_ref.shape
    WCmid = wb1_ref.shape[1]
    WCout = wb2_ref.shape[1]

    def shifted_lhs(act, width):
        # act: (Bt, H, width) f32. Zero-pad one row each side of H (SAME padding;
        # also isolates images when the batch is folded into M), then lane-concat
        # the three dy-shifted row views so dy lives in the matmul K dimension.
        # Row shifts are done in f32 (exact bf16 round-trip, no packed-slice relayout).
        z = jnp.zeros((Bt, 1, width), act.dtype)
        e = jnp.concatenate([z, act, z], axis=1)                     # (Bt, H+2, width)
        lhs = jnp.concatenate([e[:, 0:H], e[:, 1:H + 1], e[:, 2:H + 2]], axis=-1)
        return lhs.reshape(Bt * H, 3 * width).astype(jnp.bfloat16)   # M = Bt*H

    def band_matmul(lhs, wb_ref):
        # One MXU matmul per layer; bf16 inputs, f32 accumulation.
        return jax.lax.dot_general(
            lhs, wb_ref[...],
            dimension_numbers=(((1,), (0,)), ((), ())),
            preferred_element_type=jnp.float32)

    # ---- layer 1 ---------------------------------------------------------------
    raw1 = band_matmul(shifted_lhs(x_ref[...].astype(jnp.float32), WCin), wb1_ref)
    mid = jnp.maximum(raw1 * s1_ref[...] + t1_ref[...], 0.0)         # f32 epilogue

    # ---- layer 2 ---------------------------------------------------------------
    raw2 = band_matmul(shifted_lhs(mid.reshape(Bt, H, WCmid), WCmid), wb2_ref)
    out = jnp.maximum(raw2 * s2_ref[...] + t2_ref[...], 0.0)
    o_ref[...] = out.reshape(Bt, H, WCout).astype(o_ref.dtype)       # bf16, lane-dense


def _band_weights(w_hwio, width):
    """(3, 3, Cin, Cout) HWIO -> (3*width*Cin, width*Cout) banded matrix.

    Row (dy*width*Cin + w_in*Cin + ci), col (w_out*Cout + co) holds
    w[dy, w_in - w_out + 1, ci, co] when the dx tap is in range, else 0.  This folds
    the dx taps, the channel contraction, the W-direction SAME padding AND the dy
    kernel rows into a single (K = 3*W*Cin, N = W*Cout) matmul per layer.
    """
    _, _, cin, cout = w_hwio.shape
    win = jnp.arange(width)[:, None]                 # input column index
    wout = jnp.arange(width)[None, :]                # output column index
    dx = win - wout + 1                              # (width, width)
    valid = (dx >= 0) & (dx < 3)
    gathered = w_hwio[:, jnp.clip(dx, 0, 2)]         # (3, w_in, w_out, cin, cout)
    gathered = gathered * valid[None, :, :, None, None]
    band = jnp.transpose(gathered, (0, 1, 3, 2, 4))  # (3, w_in, ci, w_out, co)
    return band.reshape(3 * width * cin, width * cout)


def double_conv(x_nchw, params, *, batch_tile=None):
    """Forward pass of DoubleConv. Input/output are NCHW f32 like PyTorch."""
    (w1, s1, t1), (w2, s2, t2) = params
    B, Cin, H, W = x_nchw.shape
    Cmid = w1.shape[-1]
    Cout = w2.shape[-1]
    Bt = B if batch_tile is None else batch_tile
    assert B % Bt == 0, "batch_tile must divide the batch"

    # NCHW -> NHWC only because the PyTorch module boundary is NCHW (keep NHWC
    # end-to-end in a real model so this full HBM pass disappears). bf16 feeds the
    # MXU; lane-dense (rows, W*C) layout for the kernel.
    x = jnp.transpose(x_nchw, (0, 2, 3, 1)).astype(jnp.bfloat16).reshape(B, H, W * Cin)

    wb1 = _band_weights(w1, W).astype(jnp.bfloat16)      # (3*W*Cin,  W*Cmid)
    wb2 = _band_weights(w2, W).astype(jnp.bfloat16)      # (3*W*Cmid, W*Cout)
    s1r = jnp.tile(s1, W).reshape(1, W * Cmid).astype(jnp.float32)
    t1r = jnp.tile(t1, W).reshape(1, W * Cmid).astype(jnp.float32)
    s2r = jnp.tile(s2, W).reshape(1, W * Cout).astype(jnp.float32)
    t2r = jnp.tile(t2, W).reshape(1, W * Cout).astype(jnp.float32)

    # Effective conv FLOPs (not the ~(W/3)x band-inflated MXU FLOPs), so the XLA
    # scheduler is not misled.
    flops = 2 * B * H * W * 9 * (Cin * Cmid + Cmid * Cout)
    bytes_accessed = (B * H * W * Cin * 2
                      + 3 * W * Cin * W * Cmid * 2
                      + 3 * W * Cmid * W * Cout * 2
                      + (2 * W * Cmid + 2 * W * Cout) * 4
                      + B * H * W * Cout * 2)

    # NOTE (scaling): for larger W/C add a W-tile grid axis + 128(/256)-wide Cout
    # tiles or switch to channel-axis im2col before the O(W^2*C^2) band weights
    # exceed v7x's 32 MiB scoped VMEM.
    # NOTE (v7x): with B a multiple of 2, pass batch_tile=B//2 and mark the batch
    # grid axis core-parallel (pltpu.CORE_PARALLEL) to use both TensorCores.
    out = pl.pallas_call(
        _double_conv_kernel,
        out_shape=jax.ShapeDtypeStruct((B, H, W * Cout), jnp.bfloat16),
        grid=(B // Bt,),
        in_specs=[
            pl.BlockSpec((Bt, H, W * Cin), lambda b: (b, 0, 0)),
            pl.BlockSpec((3 * W * Cin, W * Cmid), lambda b: (0, 0)),
            pl.BlockSpec((1, W * Cmid), lambda b: (0, 0)),
            pl.BlockSpec((1, W * Cmid), lambda b: (0, 0)),
            pl.BlockSpec((3 * W * Cmid, W * Cout), lambda b: (0, 0)),
            pl.BlockSpec((1, W * Cout), lambda b: (0, 0)),
            pl.BlockSpec((1, W * Cout), lambda b: (0, 0)),
        ],
        out_specs=pl.BlockSpec((Bt, H, W * Cout), lambda b: (b, 0, 0)),
        compiler_params=pltpu.CompilerParams(
            dimension_semantics=("parallel",),
            vmem_limit_bytes=32 * 1024 * 1024),
        cost_estimate=pl.CostEstimate(
            flops=flops, transcendentals=0, bytes_accessed=bytes_accessed),
    )(x, wb1, s1r, t1r, wb2, s2r, t2r)

    out = out.reshape(B, H, W, Cout)                 # free row-major reshape
    # NHWC -> NCHW + cast back to f32 at the module boundary (fused by XLA).
    return jnp.transpose(out, (0, 3, 1, 2)).astype(jnp.float32)


def init_double_conv_params(key, in_channels, out_channels, mid_channels=None):
    """Deterministic synthetic params matching nn.Conv2d / nn.BatchNorm2d (eval mode)."""
    if not mid_channels:
        mid_channels = out_channels
    ks = jax.random.split(key, 10)
    eps = 1e-5

    def conv_w(k, cin, cout):
        w_oihw = 0.1 * jax.random.normal(k, (cout, cin, 3, 3), jnp.float32)
        return jnp.transpose(w_oihw, (2, 3, 1, 0))   # HWIO

    def bn(kg, kb, km, kv, c):
        gamma = 1.0 + 0.1 * jax.random.normal(kg, (c,), jnp.float32)
        beta = 0.1 * jax.random.normal(kb, (c,), jnp.float32)
        mean = 0.1 * jax.random.normal(km, (c,), jnp.float32)
        var = jnp.abs(jax.random.normal(kv, (c,), jnp.float32)) + 0.5
        scale = gamma / jnp.sqrt(var + eps)
        shift = beta - mean * scale
        return scale, shift

    w1 = conv_w(ks[0], in_channels, mid_channels)
    s1, t1 = bn(ks[1], ks[2], ks[3], ks[4], mid_channels)
    w2 = conv_w(ks[5], mid_channels, out_channels)
    s2, t2 = bn(ks[6], ks[7], ks[8], ks[9], out_channels)
    return (w1, s1, t1), (w2, s2, t2)


def _reference(x_nchw, params):
    """Pure-JAX f32 reference (no Pallas)."""
    (w1, s1, t1), (w2, s2, t2) = params
    x = jnp.transpose(x_nchw, (0, 2, 3, 1))

    def layer(x, w, s, t):
        y = jax.lax.conv_general_dilated(
            x, w, window_strides=(1, 1), padding="SAME",
            dimension_numbers=("NHWC", "HWIO", "NHWC"))
        y = y * s.reshape(1, 1, 1, -1) + t.reshape(1, 1, 1, -1)
        return jnp.maximum(y, 0.0)

    y = layer(x, w1, s1, t1)
    y = layer(y, w2, s2, t2)
    return jnp.transpose(y, (0, 3, 1, 2))


if __name__ == "__main__":
    key = jax.random.PRNGKey(0)
    k_x, k_p = jax.random.split(key)

    B, Cin, H, W = 2, 4, 16, 16
    Cout = 8
    x = jax.random.normal(k_x, (B, Cin, H, W), jnp.float32)
    params = init_double_conv_params(k_p, Cin, Cout)

    fwd = jax.jit(double_conv)
    out = jax.block_until_ready(fwd(x, params))

    ref = _reference(x, params)
    assert out.shape == (B, Cout, H, W)
    # bf16 matmul inputs + bf16 output store (f32 accumulation / epilogue) -> looser
    # tolerance than pure f32.
    assert jnp.allclose(out, ref, atol=5e-2, rtol=5e-2), \
        float(jnp.max(jnp.abs(out - ref)))

    print("KERNEL_OK")
</pallas_src>

<mosaic_0001>
module attributes {stable_mosaic.version = 11 : i64} {
  func.func @_double_conv_kernel(%arg0: i32, %arg1: memref<2x16x64xbf16, #tpu.memory_space<vmem>>, %arg2: memref<192x128xbf16, #tpu.memory_space<vmem>>, %arg3: memref<1x128xf32, #tpu.memory_space<vmem>>, %arg4: memref<1x128xf32, #tpu.memory_space<vmem>>, %arg5: memref<384x128xbf16, #tpu.memory_space<vmem>>, %arg6: memref<1x128xf32, #tpu.memory_space<vmem>>, %arg7: memref<1x128xf32, #tpu.memory_space<vmem>>, %arg8: memref<2x16x128xbf16, #tpu.memory_space<vmem>>) attributes {dimension_semantics = [#tpu.dimension_semantics<parallel>], iteration_bounds = array<i64: 1>, scalar_prefetch = 0 : i64, scratch_operands = 0 : i64, tpu.core_type = #tpu.core_type<tc>, window_params = [{transform_indices = @transform_0, window_bounds = array<i64: 2, 16, 64>}, {pipeline_mode = #tpu.pipeline_mode<synchronous>, transform_indices = @transform_1, window_bounds = array<i64: 192, 128>}, {pipeline_mode = #tpu.pipeline_mode<synchronous>, transform_indices = @transform_2, window_bounds = array<i64: 1, 128>}, {pipeline_mode = #tpu.pipeline_mode<synchronous>, transform_indices = @transform_3, window_bounds = array<i64: 1, 128>}, {pipeline_mode = #tpu.pipeline_mode<synchronous>, transform_indices = @transform_4, window_bounds = array<i64: 384, 128>}, {pipeline_mode = #tpu.pipeline_mode<synchronous>, transform_indices = @transform_5, window_bounds = array<i64: 1, 128>}, {pipeline_mode = #tpu.pipeline_mode<synchronous>, transform_indices = @transform_6, window_bounds = array<i64: 1, 128>}, {transform_indices = @transform_7, window_bounds = array<i64: 2, 16, 128>}]} {
    %c0 = arith.constant 0 : index
    %c0_0 = arith.constant 0 : index
    %c0_1 = arith.constant 0 : index
    %0 = vector.load %arg1[%c0, %c0_0, %c0_1] : memref<2x16x64xbf16, #tpu.memory_space<vmem>>, vector<2x16x64xbf16>
    %1 = arith.extf %0 : vector<2x16x64xbf16> to vector<2x16x64xf32>
    %cst = arith.constant 0.000000e+00 : f32
    %2 = vector.broadcast %cst : f32 to vector<2x1x64xf32>
    %3 = tpu.concatenate %2, %1, %2 in 1 : vector<2x1x64xf32>, vector<2x16x64xf32>, vector<2x1x64xf32> -> vector<2x18x64xf32>
    %4 = vector.extract_strided_slice %3 {offsets = [0, 0, 0], sizes = [2, 16, 64], strides = [1, 1, 1]} : vector<2x18x64xf32> to vector<2x16x64xf32>
    %5 = vector.extract_strided_slice %3 {offsets = [0, 1, 0], sizes = [2, 16, 64], strides = [1, 1, 1]} : vector<2x18x64xf32> to vector<2x16x64xf32>
    %6 = vector.extract_strided_slice %3 {offsets = [0, 2, 0], sizes = [2, 16, 64], strides = [1, 1, 1]} : vector<2x18x64xf32> to vector<2x16x64xf32>
    %7 = tpu.concatenate %4, %5, %6 in 2 : vector<2x16x64xf32>, vector<2x16x64xf32>, vector<2x16x64xf32> -> vector<2x16x192xf32>
    %8 = vector.shape_cast %7 : vector<2x16x192xf32> to vector<32x192xf32>
    %9 = arith.truncf %8 : vector<32x192xf32> to vector<32x192xbf16>
    %c0_2 = arith.constant 0 : index
    %c0_3 = arith.constant 0 : index
    %10 = vector.load %arg2[%c0_2, %c0_3] : memref<192x128xbf16, #tpu.memory_space<vmem>>, vector<192x128xbf16>
    %cst_4 = arith.constant dense<0.000000e+00> : vector<32x128xf32>
    %11 = tpu.matmul %9, %10, %cst_4 {dimension_numbers = #tpu.dot_dimension_numbers<[1], [0], [0], [1], [0, 0, 1, 1], [], []>} : vector<32x192xbf16>, vector<192x128xbf16>, vector<32x128xf32> -> vector<32x128xf32>
    %c0_5 = arith.constant 0 : index
    %c0_6 = arith.constant 0 : index
    %12 = vector.load %arg3[%c0_5, %c0_6] : memref<1x128xf32, #tpu.memory_space<vmem>>, vector<1x128xf32>
    %13 = vector.broadcast %12 : vector<1x128xf32> to vector<32x128xf32>
    %14 = arith.mulf %11, %13 : vector<32x128xf32>
    %c0_7 = arith.constant 0 : index
    %c0_8 = arith.constant 0 : index
    %15 = vector.load %arg4[%c0_7, %c0_8] : memref<1x128xf32, #tpu.memory_space<vmem>>, vector<1x128xf32>
    %16 = vector.broadcast %15 : vector<1x128xf32> to vector<32x128xf32>
    %17 = arith.addf %14, %16 : vector<32x128xf32>
    %cst_9 = arith.constant 0.000000e+00 : f32
    %18 = vector.broadcast %cst_9 : f32 to vector<32x128xf32>
    %19 = arith.maximumf %17, %18 : vector<32x128xf32>
    %20 = vector.shape_cast %19 : vector<32x128xf32> to vector<2x16x128xf32>
    %cst_10 = arith.constant 0.000000e+00 : f32
    %21 = vector.broadcast %cst_10 : f32 to vector<2x1x128xf32>
    %22 = tpu.concatenate %21, %20, %21 in 1 : vector<2x1x128xf32>, vector<2x16x128xf32>, vector<2x1x128xf32> -> vector<2x18x128xf32>
    %23 = vector.extract_strided_slice %22 {offsets = [0, 0, 0], sizes = [2, 16, 128], strides = [1, 1, 1]} : vector<2x18x128xf32> to vector<2x16x128xf32>
    %24 = vector.extract_strided_slice %22 {offsets = [0, 1, 0], sizes = [2, 16, 128], strides = [1, 1, 1]} : vector<2x18x128xf32> to vector<2x16x128xf32>
    %25 = vector.extract_strided_slice %22 {offsets = [0, 2, 0], sizes = [2, 16, 128], strides = [1, 1, 1]} : vector<2x18x128xf32> to vector<2x16x128xf32>
    %26 = tpu.concatenate %23, %24, %25 in 2 : vector<2x16x128xf32>, vector<2x16x128xf32>, vector<2x16x128xf32> -> vector<2x16x384xf32>
    %27 = vector.shape_cast %26 : vector<2x16x384xf32> to vector<32x384xf32>
    %28 = arith.truncf %27 : vector<32x384xf32> to vector<32x384xbf16>
    %c0_11 = arith.constant 0 : index
    %c0_12 = arith.constant 0 : index
    %29 = vector.load %arg5[%c0_11, %c0_12] : memref<384x128xbf16, #tpu.memory_space<vmem>>, vector<384x128xbf16>
    %cst_13 = arith.constant dense<0.000000e+00> : vector<32x128xf32>
    %30 = tpu.matmul %28, %29, %cst_13 {dimension_numbers = #tpu.dot_dimension_numbers<[1], [0], [0], [1], [0, 0, 1, 1], [], []>} : vector<32x384xbf16>, vector<384x128xbf16>, vector<32x128xf32> -> vector<32x128xf32>
    %c0_14 = arith.constant 0 : index
    %c0_15 = arith.constant 0 : index
    %31 = vector.load %arg6[%c0_14, %c0_15] : memref<1x128xf32, #tpu.memory_space<vmem>>, vector<1x128xf32>
    %32 = vector.broadcast %31 : vector<1x128xf32> to vector<32x128xf32>
    %33 = arith.mulf %30, %32 : vector<32x128xf32>
    %c0_16 = arith.constant 0 : index
    %c0_17 = arith.constant 0 : index
    %34 = vector.load %arg7[%c0_16, %c0_17] : memref<1x128xf32, #tpu.memory_space<vmem>>, vector<1x128xf32>
    %35 = vector.broadcast %34 : vector<1x128xf32> to vector<32x128xf32>
    %36 = arith.addf %33, %35 : vector<32x128xf32>
    %cst_18 = arith.constant 0.000000e+00 : f32
    %37 = vector.broadcast %cst_18 : f32 to vector<32x128xf32>
    %38 = arith.maximumf %36, %37 : vector<32x128xf32>
    %39 = vector.shape_cast %38 : vector<32x128xf32> to vector<2x16x128xf32>
    %40 = arith.truncf %39 : vector<2x16x128xf32> to vector<2x16x128xbf16>
    %c0_19 = arith.constant 0 : index
    %c0_20 = arith.constant 0 : index
    %c0_21 = arith.constant 0 : index
    %41 = vector.load %arg8[%c0_19, %c0_20, %c0_21] : memref<2x16x128xbf16, #tpu.memory_space<vmem>>, vector<2x16x128xbf16>
    tpu.vector_store %arg8[%c0_19, %c0_20, %c0_21], %40 {strides = array<i32>} : memref<2x16x128xbf16, #tpu.memory_space<vmem>>, vector<2x16x128xbf16>,
    return
  }
  func.func @transform_0(%arg0: i32) -> (i32, i32, i32) {
    %c0_i32 = arith.constant 0 : i32
    %c0_i32_0 = arith.constant 0 : i32
    %c0_i32_1 = arith.constant 0 : i32
    return %arg0, %c0_i32, %c0_i32_0 : i32, i32, i32
  }
  func.func @transform_1(%arg0: i32) -> (i32, i32) {
    %c0_i32 = arith.constant 0 : i32
    %c0_i32_0 = arith.constant 0 : i32
    %c0_i32_1 = arith.constant 0 : i32
    return %c0_i32, %c0_i32_0 : i32, i32
  }
  func.func @transform_2(%arg0: i32) -> (i32, i32) {
    %c0_i32 = arith.constant 0 : i32
    %c0_i32_0 = arith.constant 0 : i32
    %c0_i32_1 = arith.constant 0 : i32
    return %c0_i32, %c0_i32_0 : i32, i32
  }
  func.func @transform_3(%arg0: i32) -> (i32, i32) {
    %c0_i32 = arith.constant 0 : i32
    %c0_i32_0 = arith.constant 0 : i32
    %c0_i32_1 = arith.constant 0 : i32
    return %c0_i32, %c0_i32_0 : i32, i32
  }
  func.func @transform_4(%arg0: i32) -> (i32, i32) {
    %c0_i32 = arith.constant 0 : i32
    %c0_i32_0 = arith.constant 0 : i32
    %c0_i32_1 = arith.constant 0 : i32
    return %c0_i32, %c0_i32_0 : i32, i32
  }
  func.func @transform_5(%arg0: i32) -> (i32, i32) {
    %c0_i32 = arith.constant 0 : i32
    %c0_i32_0 = arith.constant 0 : i32
    %c0_i32_1 = arith.constant 0 : i32
    return %c0_i32, %c0_i32_0 : i32, i32
  }
  func.func @transform_6(%arg0: i32) -> (i32, i32) {
    %c0_i32 = arith.constant 0 : i32
    %c0_i32_0 = arith.constant 0 : i32
    %c0_i32_1 = arith.constant 0 : i32
    return %c0_i32, %c0_i32_0 : i32, i32
  }
  func.func @transform_7(%arg0: i32) -> (i32, i32, i32) {
    %c0_i32 = arith.constant 0 : i32
    %c0_i32_0 = arith.constant 0 : i32
    %c0_i32_1 = arith.constant 0 : i32
    return %arg0, %c0_i32, %c0_i32_0 : i32, i32, i32
  }
}

</mosaic_0001>

<bundles_post_ra>
// kernel: tile.23
= control target key start
LH: loop header
LB: loop body
LE: loop exit
PB: predicated region body
PF: predicated region fallthrough
CT: control target
= control target key end

     0   :  { %s28_s0 = inlined_call_operand.vmem [shape: f32[8], index: 0, kind: input, shape index: {}]   ;;  %s29_s1 = inlined_call_operand.vmem [shape: f32[16,8], index: 1, kind: output, shape index: {}]  }
   0x1   :  { %v4_v0 = vld [vmem:[%s28_s0] ss:$0 sm:$0xff] }
   0x2   :  { %5 = vst [vmem:[%s29_s1] sm:$0xff] %v4_v0  ;;  %8 = vst [vmem:[%s29_s1 + $0x8] sm:$0xff] %v4_v0 }

// kernel: tile.24
= control target key start
LH: loop header
LB: loop body
LE: loop exit
PB: predicated region body
PF: predicated region fallthrough
CT: control target
= control target key end

     0   :  { %s133_s10 = smov 120   ;;  %s134_s11 = smov 104   ;;  %vm3_vm0 = vcmask 64512   ;;  %vm9_vm1 = vcmask 1048512   ;;  %vm15_vm2 = vcmask 982912   ;;  %vm21_vm3 = vcmask 917312   ;;  %s209_s0 = inlined_call_operand.vmem [shape: f32[16,8], index: 0, kind: input, shape index: {}]   ;;  %s210_s1 = inlined_call_operand.vmem [shape: f32[1,128], index: 1, kind: output, shape index: {}]  }
   0x1   :  { %v103_v0 = vld [vmem:[%s209_s0 + $0xf] sm:$0x1]   ;;  %v105_v1 = vld [vmem:[%s209_s0 + $0xd] sm:$0x1]   ;;  %v104_v2 = vld [vmem:[%s209_s0 + $0xe] sm:$0x1]  }
   0x2   :  { %7 = vrot.lane.b32.xlu0 %v103_v0, %s133_s10  ;;  %19 = vrot.lane.b32.xlu1 %v105_v1, %s134_s11  ;;  %v106_v3 = vld [vmem:[%s209_s0 + $0xc] sm:$0x1]   ;;  %s135_s16 = smov 112   ;;  %s136_s17 = smov 96   ;;  %v107_v4 = vld [vmem:[%s209_s0 + $0xb] sm:$0x1]  }
   0x3   :  { %v108_v5 = vld [vmem:[%s209_s0 + $0xa] sm:$0x1]   ;;  %v2_v6 = vld [vmem:[%s209_s0] sm:$0x1]   ;;  %s137_s24 = smov 88   ;;  %s138_s25 = smov 80  }
   0x4   :  { %4 = vst.msk [vmem:[#allocation0] sm:$0x1] %vm3_vm0, %v2_v6   ;;  %v109_v7 = vld [vmem:[%s209_s0 + $0x9] sm:$0x1]   ;;  %v110_v8 = vld [vmem:[%s209_s0 + $0x8] sm:$0x1]  }
   0x5   :  { %s139_s30 = smov 72   ;;  %s140_s2 = smov 64   ;;  %v111_v9 = vld [vmem:[%s209_s0 + $0x7] sm:$0x1]   ;;  %v112_v10 = vld [vmem:[%s209_s0 + $0x6] sm:$0x1]  }
   0x6   :  { %13 = vrot.lane.b32.xlu0 %v104_v2, %s135_s16  ;;  %25 = vrot.lane.b32.xlu1 %v106_v3, %s136_s17  ;;  %s141_s7 = smov 56   ;;  %s142_s8 = smov 48   ;;  %v113_v11 = vld [vmem:[%s209_s0 + $0x5] sm:$0x1]   ;;  %v114_v12 = vld [vmem:[%s209_s0 + $0x4] sm:$0x1]  }
   0x7   :  { %s143_s13 = smov 40   ;;  %s144_s14 = smov 32   ;;  %v115_v13 = vld [vmem:[%s209_s0 + $0x3] sm:$0x1]   ;;  %v116_v14 = vld [vmem:[%s209_s0 + $0x2] sm:$0x1]  }
   0x8   :  { %s145_s19 = smov 24   ;;  %s146_s20 = smov 16   ;;  %v117_v15 = vld [vmem:[%s209_s0 + $0x1] sm:$0x1]   ;;  %vm27_vm4 = vcmask 851712   ;;  %vm33_vm5 = vcmask 786112  }
   0x9   :  { %s147_s0 = smov 8   ;;  %vm39_vm6 = vcmask 720512   ;;  %vm45_vm7 = vcmask 654912   ;;  %vm51_vm8 = vcmask 589312   ;;  %vm57_vm9 = vcmask 523712  }
   0xa   :  { %31 = vrot.lane.b32.xlu0 %v107_v4, %s137_s24  ;;  %37 = vrot.lane.b32.xlu1 %v108_v5, %s138_s25  ;;  %vm63_vm10 = vcmask 458112   ;;  %vm69_vm11 = vcmask 392512   ;;  %vm75_vm12 = vcmask 326912   ;;  %vm81_vm13 = vcmask 261312  }
   0xb   :  { %vm87_vm14 = vcmask 195712   ;;  %vm93_vm15 = vcmask 130112  }
   0xe   :  { %43 = vrot.lane.b32.xlu0 %v109_v7, %s139_s30  ;;  %49 = vrot.lane.b32.xlu1 %v110_v8, %s140_s2 }
  0x12   :  { %55 = vrot.lane.b32.xlu0 %v111_v9, %s141_s7  ;;  %61 = vrot.lane.b32.xlu1 %v112_v10, %s142_s8 }
  0x16   :  { %67 = vrot.lane.b32.xlu0 %v113_v11, %s143_s13  ;;  %73 = vrot.lane.b32.xlu1 %v114_v12, %s144_s14 }
  0x1a   :  { %79 = vrot.lane.b32.xlu0 %v115_v13, %s145_s19  ;;  %85 = vrot.lane.b32.xlu1 %v116_v14, %s146_s20 }
  0x1e   :  { %91 = vrot.lane.b32.xlu0 %v117_v15, %s147_s0 }
  0x74   :  { %v8_v16 = vpop.permute.xlu0 %7   ;;  %v20_v17 = vpop.permute.xlu1 %19  }
  0x75   :  { %10 = vst.msk [vmem:[#allocation0] sm:$0x1] %vm9_vm1, %v8_v16  }
  0x78   :  { %v14_v18 = vpop.permute.xlu0 %13   ;;  %v26_v19 = vpop.permute.xlu1 %25  }
  0x79   :  { %16 = vst.msk [vmem:[#allocation0] sm:$0x1] %vm15_vm2, %v14_v18  }
  0x7a   :  { %22 = vst.msk [vmem:[#allocation0] sm:$0x1] %vm21_vm3, %v20_v17  }
  0x7b   :  { %28 = vst.msk [vmem:[#allocation0] sm:$0x1] %vm27_vm4, %v26_v19  }
  0x7c   :  { %v32_v20 = vpop.permute.xlu0 %31   ;;  %v38_v21 = vpop.permute.xlu1 %37  }
  0x7d   :  { %34 = vst.msk [vmem:[#allocation0] sm:$0x1] %vm33_vm5, %v32_v20  }
  0x7e   :  { %40 = vst.msk [vmem:[#allocation0] sm:$0x1] %vm39_vm6, %v38_v21  }
  0x80   :  { %v44_v22 = vpop.permute.xlu0 %43   ;;  %v50_v23 = vpop.permute.xlu1 %49  }
  0x81   :  { %46 = vst.msk [vmem:[#allocation0] sm:$0x1] %vm45_vm7, %v44_v22  }
  0x82   :  { %52 = vst.msk [vmem:[#allocation0] sm:$0x1] %vm51_vm8, %v50_v23  }
  0x84   :  { %v56_v24 = vpop.permute.xlu0 %55   ;;  %v62_v25 = vpop.permute.xlu1 %61  }
  0x85   :  { %58 = vst.msk [vmem:[#allocation0] sm:$0x1] %vm57_vm9, %v56_v24  }
  0x86   :  { %64 = vst.msk [vmem:[#allocation0] sm:$0x1] %vm63_vm10, %v62_v25  }
  0x88   :  { %v68_v26 = vpop.permute.xlu0 %67   ;;  %v74_v27 = vpop.permute.xlu1 %73  }
  0x89   :  { %70 = vst.msk [vmem:[#allocation0] sm:$0x1] %vm69_vm11, %v68_v26  }
  0x8a   :  { %76 = vst.msk [vmem:[#allocation0] sm:$0x1] %vm75_vm12, %v74_v27  }
  0x8c   :  { %v80_v28 = vpop.permute.xlu0 %79   ;;  %v86_v29 = vpop.permute.xlu1 %85  }
  0x8d   :  { %82 = vst.msk [vmem:[#allocation0] sm:$0x1] %vm81_vm13, %v80_v28  }
  0x8e   :  { %88 = vst.msk [vmem:[#allocation0] sm:$0x1] %vm87_vm14, %v86_v29  }
  0x90   :  { %v92_v30 = vpop.permute.xlu0 %91  }
  0x91   :  { %94 = vst.msk [vmem:[#allocation0] sm:$0x1] %vm93_vm15, %v92_v30  }
  0x98   :  { %v99_v31 = vld [vmem:[#allocation0] sm:$0x1] }
  0x99   :  { %102 = vst [vmem:[%s210_s1] sm:$0x1] %v99_v31 }

// kernel: double_conv.1
= control target key start
LH: loop header
LB: loop body
LE: loop exit
PB: predicated region body
PF: predicated region fallthrough
CT: control target
= control target key end

     0   :  { %v867_v2 = vmov 0   ;;  %vm39_vm0 = vcmask 1040384   ;;  %vm60_vm1 = vcmask 1046528   ;;  %vm83_vm2 = vcmask 1045504   ;;  %s868_s10 = smov 64   ;;  %s1121_s0 = inlined_call_operand.vmem [shape: bf16[2,16,64], index: 0, kind: input, shape index: {}]   ;;  %s1122_s1 = inlined_call_operand.vmem [shape: bf16[192,128], index: 1, kind: input, shape index: {}]   ;;  %s1123_s4 = inlined_call_operand.vmem [shape: bf16[384,128], index: 4, kind: input, shape index: {}]   ;;  %s1124_s2 = inlined_call_operand.vmem [shape: f32[1,128], index: 2, kind: input, shape index: {}]   ;;  %s1125_s3 = inlined_call_operand.vmem [shape: f32[1,128], index: 3, kind: input, shape index: {}]   ;;  %s1126_s5 = inlined_call_operand.vmem [shape: f32[1,128], index: 5, kind: input, shape index: {}]   ;;  %s1127_s6 = inlined_call_operand.vmem [shape: f32[1,128], index: 6, kind: input, shape index: {}]   ;;  %s1128_s7 = inlined_call_operand.vmem [shape: bf16[2,16,128], index: 7, kind: output, shape index: {}]  }
   0x1   :  { %v741_v0 = vld [vmem:[%s1121_s0] sm:$0xff]   ;;  %v758_v1 = vld [vmem:[%s1121_s0 + $0x8] sm:$0xff]   ;;  %209 = vmatprep.subr.bf16.mxu0 %v867_v2  ;;  %v831_v7 = vld [vmem:[%s1122_s1 + $0x38] sm:$0xff]   ;;  %vm98_vm3 = vcmask 523264   ;;  %vm869_vm5 = vmmov 1  }
   0x2   :  { %v742_v3 = vunpack.c.l.bf16 %v741_v0  ;;  %v743_v4 = vunpack.c.h.bf16 %v741_v0  ;;  %v746_v5 = vunpack.c.l.bf16 %v758_v1  ;;  %v747_v6 = vunpack.c.h.bf16 %v758_v1  ;;  %v832_v8 = vld [vmem:[%s1122_s1 + $0x30] sm:$0xff]   ;;  %210 = vmatpush1.bf16.msra.mxu0 %v831_v7  ;;  %v833_v24 = vld [vmem:[%s1122_s1 + $0x28] sm:$0xff]   ;;  %v834_v34 = vld [vmem:[%s1122_s1 + $0x20] sm:$0xff]  }
   0x3   :  { %211 = vmatprep.subr.bf16.mxu0 %v867_v2  ;;  %v835_v38 = vld [vmem:[%s1122_s1 + $0x18] sm:$0xff]   ;;  %v836_v42 = vld [vmem:[%s1122_s1 + $0x10] sm:$0xff]   ;;  %v847_v45 = vld [vmem:[%s1123_s4 + $0x68] sm:$0xff]  }
   0x4   :  { %v40_v9 = vrot.slane %v742_v3, 7  ;;  %v41_v10 = vrot.slane %v743_v4, 7  ;;  %v43_v11 = vrot.slane %v746_v5, 7  ;;  %v44_v12 = vrot.slane %v747_v6, 7  ;;  %v843_v40 = vld [vmem:[%s1123_s4 + $0x78] sm:$0xff]   ;;  %v845_v43 = vld [vmem:[%s1123_s4 + $0x70] sm:$0xff]   ;;  %vm722_vm4 = vmneg %vm39_vm0 }
   0x5   :  { %v844_v41 = vld [vmem:[%s1123_s4 + $0x38] sm:$0xff]   ;;  %760 = vmatprep.subr.bf16.mxu1 %v843_v40  ;;  %v846_v44 = vld [vmem:[%s1123_s4 + $0x30] sm:$0xff]   ;;  %v848_v46 = vld [vmem:[%s1123_s4 + $0x28] sm:$0xff]  }
   0x6   :  { %v925_v13 = vsel %vm39_vm0, %v40_v9, %v41_v10  ;;  %v928_v14 = vsel %vm39_vm0, 0.0, %v40_v9  ;;  %v54_v15 = vsel %vm39_vm0, %v41_v10, 0.0  ;;  %v932_v16 = vsel %vm39_vm0, %v43_v11, %v44_v12  ;;  %212 = vmatpush1.bf16.msra.mxu0 %v832_v8  ;;  %761 = vmatpush3.bf16.msra.mxu1 %v844_v41  ;;  %v837_v47 = vld [vmem:[%s1122_s1 + $0x8] sm:$0xff]   ;;  %v849_v48 = vld [vmem:[%s1123_s4 + $0x60] sm:$0xff]   ;;  %v839_v50 = vld [vmem:[%s1122_s1 + $0x58] sm:$0xff]  }
   0x7   :  { %v61_v17 = vrot.slane %v928_v14, 1  ;;  %v62_v18 = vrot.slane %v925_v13, 1  ;;  %v64_v19 = vrot.slane %v54_v15, 1  ;;  %v937_v20 = vsel %vm39_vm0, 0.0, %v43_v11  ;;  %213 = vmatprep.subr.bf16.mxu0 %v867_v2  ;;  %762 = vmatprep.subr.bf16.mxu1 %v845_v43  ;;  %v838_v49 = vld [vmem:[%s1122_s1] sm:$0xff]   ;;  %v840_v51 = vld [vmem:[%s1122_s1 + $0x50] sm:$0xff]   ;;  %vm1072_vm6 = vmpackc.low %vm869_vm5, %vm722_vm4 }
   0x8   :  { %v940_v21 = vsel %vm39_vm0, %v44_v12, 0.0  ;;  %v66_v22 = vrot.slane %v937_v20, 1  ;;  %v67_v23 = vrot.slane %v932_v16, 1  ;;  %v84_v30 = vrot.slane %v928_v14, 2  ;;  %v841_v52 = vld [vmem:[%s1122_s1 + $0x48] sm:$0xff]   ;;  %v842_v53 = vld [vmem:[%s1122_s1 + $0x40] sm:$0xff]  }
   0x9   :  { %v63_v25 = vsel %vm60_vm1, %v61_v17, %v62_v18  ;;  %v65_v26 = vsel %vm60_vm1, %v62_v18, %v64_v19  ;;  %v69_v27 = vrot.slane %v940_v21, 1  ;;  %v85_v32 = vrot.slane %v925_v13, 2  ;;  %v850_v8 = vld [vmem:[%s1123_s4 + $0x20] sm:$0xff]   ;;  %v851_v9 = vld [vmem:[%s1123_s4 + $0x58] sm:$0xff]   ;;  %v853_v11 = vld [vmem:[%s1123_s4 + $0x50] sm:$0xff]  }
   0xa   :  { %v821_v28 = vpack.i.bf16 %v65_v26, %v63_v25  ;;  %v68_v29 = vsel %vm60_vm1, %v66_v22, %v67_v23  ;;  %214 = vmatpush1.bf16.msra.mxu0 %v833_v24  ;;  %v87_v35 = vrot.slane %v54_v15, 2  ;;  %763 = vmatpush3.bf16.msra.mxu1 %v846_v44  ;;  %v92_v54 = vrot.slane %v940_v21, 2  ;;  %v852_v10 = vld [vmem:[%s1123_s4 + $0x18] sm:$0xff]   ;;  %v854_v12 = vld [vmem:[%s1123_s4 + $0x10] sm:$0xff]   ;;  %v857_v15 = vld [vmem:[%s1123_s4 + $0x40] sm:$0xff]  }
   0xb   :  { %v70_v31 = vsel %vm60_vm1, %v67_v23, %v69_v27  ;;  %215 = vmatprep.subr.bf16.mxu0 %v867_v2  ;;  %v86_v36 = vsel %vm83_vm2, %v84_v30, %v85_v32  ;;  %764 = vmatprep.subr.bf16.mxu1 %v847_v45  ;;  %v89_v55 = vrot.slane %v937_v20, 2  ;;  %v90_v56 = vrot.slane %v932_v16, 2  ;;  %v859_v17 = vld [vmem:[%s1123_s4 + $0xb8] sm:$0xff]   ;;  %v696_v18 = vld [vmem:[%s1124_s2] ss:$0 sm:$0xff] }
   0xc   :  { %822 = vrot.lane.b32.xlu0 %v821_v28, %s868_s10  ;;  %v826_v33 = vpack.i.bf16 %v70_v31, %v68_v29  ;;  %v88_v37 = vsel %vm83_vm2, %v85_v32, %v87_v35 }
   0xd   :  { %v104_v39 = vpack.c.bf16 %v88_v37, %v86_v36  ;;  %v91_v58 = vsel %vm83_vm2, %v89_v55, %v90_v56  ;;  %v93_v59 = vsel %vm83_vm2, %v90_v56, %v92_v54  ;;  %v860_v55 = vld [vmem:[%s1123_s4 + $0xb0] sm:$0xff]  }
   0xe   :  { %216 = vmatpush1.bf16.msra.mxu0 %v834_v34  ;;  %765 = vmatpush3.bf16.msra.mxu1 %v848_v46  ;;  %v106_v0 = vpack.c.bf16 %v93_v59, %v91_v58 }
   0xf   :  { %217 = vmatprep.subr.bf16.mxu0 %v867_v2  ;;  %694 = vmatprep.mubr.msk.bf16.mxu0 %vm98_vm3, %v104_v39 }
  0x10   :  { %827 = vrot.lane.b32.xlu0 %v826_v33, %s868_s10  ;;  %766 = vmatprep.subr.bf16.mxu1 %v849_v48 }
  0x12   :  { %218 = vmatpush1.bf16.msra.mxu0 %v835_v38  ;;  %767 = vmatpush3.bf16.msra.mxu1 %v850_v8  ;;  %v862_v8 = vld [vmem:[%s1123_s4 + $0xa0] sm:$0xff]  }
  0x13   :  { %219 = vmatprep.subr.bf16.mxu0 %v867_v2  ;;  %768 = vmatprep.subr.bf16.mxu1 %v851_v9 }
  0x16   :  { %220 = vmatpush1.bf16.msra.mxu0 %v836_v42  ;;  %769 = vmatpush3.bf16.msra.mxu1 %v852_v10  ;;  %v863_v10 = vld [vmem:[%s1123_s4 + $0x98] sm:$0xff]  }
  0x17   :  { %221 = vmatprep.subr.bf16.mxu0 %v867_v2  ;;  %770 = vmatprep.subr.bf16.mxu1 %v853_v11  ;;  %v864_v11 = vld [vmem:[%s1123_s4 + $0x90] sm:$0xff]  }
  0x1a   :  { %222 = vmatpush1.bf16.msra.mxu0 %v837_v47  ;;  %771 = vmatpush3.bf16.msra.mxu1 %v854_v12  ;;  %v865_v12 = vld [vmem:[%s1123_s4 + $0x88] sm:$0xff]  }
  0x1b   :  { %223 = vmatprep.subr.bf16.mxu0 %v867_v2 }
  0x1e   :  { %224 = vmatpush1.bf16.msra.mxu0 %v838_v49 }
  0x1f   :  { %233 = vmatprep.subr.bf16.mxu0 %v867_v2 }
  0x22   :  { %234 = vmatpush2.bf16.msra.mxu0 %v839_v50 }
  0x23   :  { %235 = vmatprep.subr.bf16.mxu0 %v867_v2 }
  0x26   :  { %236 = vmatpush2.bf16.msra.mxu0 %v840_v51 }
  0x27   :  { %237 = vmatprep.subr.bf16.mxu0 %v867_v2 }
  0x2a   :  { %238 = vmatpush2.bf16.msra.mxu0 %v841_v52 }
  0x2b   :  { %239 = vmatprep.subr.bf16.mxu0 %v867_v2 }
  0x2e   :  { %240 = vmatpush2.bf16.msra.mxu0 %v842_v53 }
  0x7e   :  { %v823_v57 = vpop.permute.xlu0 %822 }
  0x7f   :  { %v825_v60 = vunpack.i.h.bf16 %v823_v57  ;;  %v824_v61 = vunpack.i.l.bf16 %v823_v57 }
  0x81   :  { %v99_v62 = vsel %vm98_vm3, %v928_v14, %v824_v61  ;;  %v100_v63 = vsel %vm98_vm3, %v925_v13, %v825_v60  ;;  %v855_v13 = vld [vmem:[%s1123_s4 + $0x48] sm:$0xff]  }
  0x82   :  { %v103_v1 = vpack.c.bf16 %v100_v63, %v99_v62  ;;  %v828_v2 = vpop.permute.xlu0 %827  ;;  %v856_v14 = vld [vmem:[%s1123_s4 + $0x8] sm:$0xff]   ;;  %772 = vmatprep.subr.bf16.mxu1 %v855_v13  ;;  %v866_v13 = vld [vmem:[%s1123_s4 + $0x80] sm:$0xff]  }
  0x83   :  { %v830_v3 = vunpack.i.h.bf16 %v828_v2  ;;  %v829_v4 = vunpack.i.l.bf16 %v828_v2  ;;  %773 = vmatpush3.bf16.msra.mxu1 %v856_v14 }
  0x84   :  { %242 = vmatmul.mubr.bf16.vlgmr.msra.gmra.mxu0 %v103_v1  ;;  %774 = vmatprep.subr.bf16.mxu1 %v857_v15  ;;  %v861_v1 = vld [vmem:[%s1123_s4 + $0xa8] sm:$0xff]  }
  0x85   :  { %695 = vmatprep.mubr.msk.bf16.mxu0 %vm98_vm3, %v106_v0  ;;  %v101_v5 = vsel %vm98_vm3, %v937_v20, %v829_v4  ;;  %v102_v6 = vsel %vm98_vm3, %v932_v16, %v830_v3  ;;  %v858_v16 = vld [vmem:[%s1123_s4] sm:$0xff]  }
  0x86   :  { %v105_v7 = vpack.c.bf16 %v102_v6, %v101_v5  ;;  %v697_v20 = vld [vmem:[%s1125_s3] ss:$0 sm:$0xff] }
  0x87   :  { %775 = vmatpush3.bf16.msra.mxu1 %v858_v16 }
  0x88   :  { %798 = vmatprep.subr.bf16.mxu1 %v859_v17 }
  0x8c   :  { %250 = vmatmul.mubr.bf16.gmra.mxu0 %v105_v7 }
 0x144   :  { %v243_v19 = vpop.f32.mrf.mxu0 }
 0x145   :  { %v265_v21 = vmul.f32 %v696_v18, %v243_v19 }
 0x146   :  { %v245_v22 = vpop.f32.mrf.mxu0 }
 0x147   :  { %v276_v23 = vadd.f32 %v697_v20, %v265_v21 }
 0x148   :  { %v246_v24 = vpop.f32.mrf.mxu0 }
 0x149   :  { %v280_v25 = vmax.f32 %v276_v23, 0.0  ;;  %v266_v26 = vmul.f32 %v696_v18, %v246_v24 }
 0x14a   :  { %v248_v27 = vpop.f32.mrf.mxu0 }
 0x14b   :  { %v288_v28 = vrot.slane %v280_v25, 7  ;;  %v277_v29 = vadd.f32 %v697_v20, %v266_v26 }
 0x14c   :  { %v251_v30 = vpop.f32.mrf.mxu0 }
 0x14d   :  { %v281_v31 = vmax.f32 %v277_v29, 0.0  ;;  %v267_v32 = vmul.f32 %v696_v18, %v251_v30  ;;  %v300_v36 = vsel %vm39_vm0, 0.0, %v288_v28  ;;  %v730_v30 = vld [vmem:[%s1126_s5] ss:$0 sm:$0xff] }
 0x14e   :  { %v253_v33 = vpop.f32.mrf.mxu0  ;;  %v308_v42 = vrot.slane %v300_v36, 1  ;;  %v322_v62 = vrot.slane %v300_v36, 2 }
 0x14f   :  { %v289_v34 = vrot.slane %v281_v31, 7  ;;  %v278_v35 = vadd.f32 %v697_v20, %v267_v32 }
 0x150   :  { %v254_v37 = vpop.f32.mrf.mxu0 }
 0x151   :  { %v302_v38 = vsel %vm39_vm0, %v289_v34, 0.0  ;;  %v282_v39 = vmax.f32 %v278_v35, 0.0  ;;  %v268_v40 = vmul.f32 %v696_v18, %v254_v37  ;;  %v290_v41 = vsel %vm39_vm0, %v288_v28, %v289_v34  ;;  %v731_v37 = vld [vmem:[%s1127_s6] ss:$0 sm:$0xff] }
 0x152   :  { %v309_v43 = vrot.slane %v290_v41, 1  ;;  %v311_v44 = vrot.slane %v302_v38, 1  ;;  %v256_v45 = vpop.f32.mrf.mxu0  ;;  %v724_v54 = vpack.c.bf16 %v290_v41, %v288_v28  ;;  %v323_v57 = vrot.slane %v290_v41, 2 }
 0x153   :  { %v291_v46 = vrot.slane %v282_v39, 7  ;;  %v279_v47 = vadd.f32 %v697_v20, %v268_v40  ;;  %v325_v58 = vrot.slane %v302_v38, 2 }
 0x154   :  { %v310_v48 = vsel %vm60_vm1, %v308_v42, %v309_v43  ;;  %v312_v49 = vsel %vm60_vm1, %v309_v43, %v311_v44  ;;  %v324_v2 = vsel %vm83_vm2, %v322_v62, %v323_v57 }
 0x155   :  { %v301_v50 = vsel %vm39_vm0, 0.0, %v291_v46  ;;  %v283_v51 = vmax.f32 %v279_v47, 0.0  ;;  %v337_v52 = vpack.c.bf16 %v312_v49, %v310_v48  ;;  %v326_v6 = vsel %vm83_vm2, %v323_v57, %v325_v58 }
 0x156   :  { %v313_v59 = vrot.slane %v301_v50, 1  ;;  %v338_v9 = vpack.c.bf16 %v326_v6, %v324_v2  ;;  %v327_v14 = vrot.slane %v301_v50, 2 }
 0x157   :  { %v292_v56 = vrot.slane %v283_v51, 7  ;;  %566 = vmatprep.mubr.bf16.mxu1 %v337_v52 }
 0x158   :  { %725 = vmatmul.mubr.msk.bf16.vlgmr.msra.gmra.mxu1 %vm1072_vm6, %v724_v54 }
 0x159   :  { %v293_v60 = vsel %vm39_vm0, %v291_v46, %v292_v56  ;;  %v303_v61 = vsel %vm39_vm0, %v292_v56, 0.0  ;;  %799 = vmatpush3.bf16.msra.mxu1 %v859_v17 }
 0x15a   :  { %v316_v63 = vrot.slane %v303_v61, 1  ;;  %800 = vmatprep.subr.bf16.mxu1 %v860_v55  ;;  %v314_v0 = vrot.slane %v293_v60, 1  ;;  %v728_v5 = vpack.c.bf16 %v293_v60, %v291_v46  ;;  %v328_v15 = vrot.slane %v293_v60, 2 }
 0x15b   :  { %v330_v16 = vrot.slane %v303_v61, 2 }
 0x15c   :  { %v315_v3 = vsel %vm60_vm1, %v313_v59, %v314_v0  ;;  %v317_v4 = vsel %vm60_vm1, %v314_v0, %v316_v63  ;;  %v329_v18 = vsel %vm83_vm2, %v327_v14, %v328_v15 }
 0x15d   :  { %801 = vmatpush3.bf16.msra.mxu1 %v860_v55  ;;  %v340_v7 = vpack.c.bf16 %v317_v4, %v315_v3  ;;  %v331_v17 = vsel %vm83_vm2, %v328_v15, %v330_v16 }
 0x15e   :  { %802 = vmatprep.subr.bf16.mxu1 %v861_v1  ;;  %v341_v19 = vpack.c.bf16 %v331_v17, %v329_v18 }
 0x15f   :  { %574 = vmatprep.mubr.bf16.mxu1 %v340_v7 }
 0x160   :  { %729 = vmatmul.mubr.msk.bf16.gmra.mxu1 %vm1072_vm6, %v728_v5 }
 0x161   :  { %803 = vmatpush3.bf16.msra.mxu1 %v861_v1  ;;  %814 = vmatprep.mubr.bf16.mxu1 %v338_v9 }
 0x162   :  { %804 = vmatprep.subr.bf16.mxu1 %v862_v8 }
 0x165   :  { %805 = vmatpush3.bf16.msra.mxu1 %v862_v8 }
 0x166   :  { %806 = vmatprep.subr.bf16.mxu1 %v863_v10 }
 0x169   :  { %807 = vmatpush3.bf16.msra.mxu1 %v863_v10 }
 0x16a   :  { %808 = vmatprep.subr.bf16.mxu1 %v864_v11 }
 0x16d   :  { %809 = vmatpush3.bf16.msra.mxu1 %v864_v11 }
 0x16e   :  { %810 = vmatprep.subr.bf16.mxu1 %v865_v12 }
 0x171   :  { %811 = vmatpush3.bf16.msra.mxu1 %v865_v12 }
 0x172   :  { %812 = vmatprep.subr.bf16.mxu1 %v866_v13 }
 0x175   :  { %813 = vmatpush3.bf16.msra.mxu1 %v866_v13 }
 0x178   :  { %815 = vmatmul.mubr.bf16.vlgmr.msra.gmra.mxu1 %v341_v19 }
 0x218   :  { %v776_v20 = vpop.f32.mrf.mxu1 }
 0x21a   :  { %v777_v21 = vpop.f32.mrf.mxu1 }
 0x21b   :  { %v778_v31 = vadd.f32 %v777_v21, %v776_v20 }
 0x21c   :  { %v779_v22 = vpop.f32.mrf.mxu1 }
 0x21e   :  { %v780_v23 = vpop.f32.mrf.mxu1 }
 0x21f   :  { %v781_v39 = vadd.f32 %v780_v23, %v779_v22 }
 0x220   :  { %v782_v24 = vpop.f32.mrf.mxu1 }
 0x222   :  { %v783_v25 = vpop.f32.mrf.mxu1 }
 0x223   :  { %v784_v28 = vadd.f32 %v783_v25, %v782_v24 }
 0x224   :  { %v785_v26 = vpop.f32.mrf.mxu1 }
 0x226   :  { %v786_v27 = vpop.f32.mrf.mxu1 }
 0x227   :  { %v787_v34 = vadd.f32 %v786_v27, %v785_v26 }
 0x238   :  { %v816_v29 = vpop.f32.mrf.mxu1 }
 0x239   :  { %v626_v32 = vadd.f32 %v816_v29, %v784_v28 }
 0x23a   :  { %v617_v33 = vpop.f32.mrf.mxu1 }
 0x23b   :  { %v641_v35 = vmul.f32 %v730_v30, %v626_v32  ;;  %v618_v36 = vadd.f32 %v778_v31, %v617_v33 }
 0x23c   :  { %v817_v38 = vpop.f32.mrf.mxu1 }
 0x23d   :  { %v639_v40 = vmul.f32 %v730_v30, %v618_v36  ;;  %v629_v41 = vadd.f32 %v817_v38, %v787_v34  ;;  %v652_v43 = vadd.f32 %v731_v37, %v641_v35 }
 0x23e   :  { %v620_v42 = vpop.f32.mrf.mxu1 }
 0x23f   :  { %v642_v44 = vmul.f32 %v730_v30, %v629_v41  ;;  %v621_v45 = vadd.f32 %v781_v39, %v620_v42  ;;  %v650_v46 = vadd.f32 %v731_v37, %v639_v40  ;;  %v656_v49 = vmax.f32 %v652_v43, 0.0 }
 0x241   :  { %v653_v47 = vadd.f32 %v731_v37, %v642_v44  ;;  %v640_v48 = vmul.f32 %v730_v30, %v621_v45  ;;  %v654_v52 = vmax.f32 %v650_v46, 0.0 }
 0x243   :  { %v657_v50 = vmax.f32 %v653_v47, 0.0  ;;  %v651_v51 = vadd.f32 %v731_v37, %v640_v48 }
 0x245   :  { %v756_v53 = vpack.c.bf16 %v657_v50, %v656_v49  ;;  %v655_v54 = vmax.f32 %v651_v51, 0.0 }
 0x247   :  { %759 = vst [vmem:[%s1128_s7 + $0x8] sm:$0xff] %v756_v53   ;;  %v751_v55 = vpack.c.bf16 %v655_v54, %v654_v52 }
 0x249   :  { %752 = vst [vmem:[%s1128_s7] sm:$0xff] %v751_v55  }

</bundles_post_ra>
